<compile_context>
chip_gen: v6e
topology: v6e:2x2x1
jax: 0.10.0
libtpu: 0.0.40
codegen_flags: <defaults>
</compile_context>

<pallas_src>
import jax
import jax.numpy as jnp
from jax.experimental import pallas as pl
from jax.experimental.pallas import tpu as pltpu

# ----------------------------- config (small) -----------------------------
VOCAB = 128
MAX_POS = 16
N_TYPES = 2
HIDDEN = 32
FFN = 64
SEQ = 8
BATCH = 2

# bf16 weight-slab row offsets (16-sublane aligned for bf16 packing)
def _round16(n):
    return (n + 15) & ~15

EMB_ROWS = VOCAB + MAX_POS + N_TYPES          # 146 real embedding rows
EMB_PAD = _round16(EMB_ROWS)                  # 160 (padding rows are zero)
QKV_R0 = EMB_PAD                              # 160
WO_R0 = QKV_R0 + HIDDEN                       # 192
W1_R0 = WO_R0 + HIDDEN                        # 224
W2_R0 = W1_R0 + HIDDEN                        # 256
W_ROWS = W2_R0 + FFN                          # 320
W_COLS = 128

# f32 vector-slab rows
(R_EMB_G, R_EMB_B, R_BO, R_LN1_G, R_LN1_B,
 R_B2, R_LN2_G, R_LN2_B, R_BQKV, R_B1) = range(10)
F_ROWS = 10
F_COLS = 128


# ----------------------------- in-kernel helpers -----------------------------
def _ln(x, g, b, eps=1e-12):
    mu = jnp.mean(x, axis=-1, keepdims=True)
    xc = x - mu
    var = jnp.mean(xc * xc, axis=-1, keepdims=True)
    return xc * jax.lax.rsqrt(var + eps) * g + b


# ----------------------------- Pallas kernel -----------------------------
def bert_encoder_kernel(int_ref, w_ref, f_ref, out_ref):
    B, H = out_ref.shape
    BS = int_ref.shape[0] - 1                  # B * S (seq-major rows)

    # ---- unpack the single small i32 tile ----
    tok_i = int_ref[0:BS, 0:1]                 # (BS,1) absolute row in fused emb table
    pos_i = int_ref[0:BS, 1:2]                 # (BS,1) offset already applied
    typ_i = int_ref[0:BS, 2:3]                 # (BS,1) offset already applied
    key_b = int_ref[BS:BS + 1, 0:BS]           # (1,BS) batch id of key column, -1 if padded

    # ---- fused token + position + type embedding: one one-hot MXU matmul ----
    col = jax.lax.broadcasted_iota(jnp.int32, (BS, EMB_PAD), 1)
    onehot = jnp.logical_or(jnp.logical_or(col == tok_i, col == pos_i),
                            col == typ_i).astype(jnp.bfloat16)
    emb = jnp.dot(onehot, w_ref[0:EMB_PAD, 0:H],
                  preferred_element_type=jnp.float32)                          # (BS,H) f32
    x = _ln(emb, f_ref[R_EMB_G:R_EMB_G + 1, 0:H], f_ref[R_EMB_B:R_EMB_B + 1, 0:H])

    # ---- fused QKV projection (1/sqrt(H) pre-folded into the Q weights) ----
    qkv = jnp.dot(x.astype(jnp.bfloat16), w_ref[QKV_R0:QKV_R0 + H, 0:3 * H],
                  preferred_element_type=jnp.float32) + f_ref[R_BQKV:R_BQKV + 1, 0:3 * H]
    k = qkv[:, H:2 * H]                                                        # (BS,H)
    v = qkv[:, 2 * H:3 * H]                                                    # (BS,H)

    # seq-major layout => CLS rows are the first B rows: one contiguous static slice
    x_cls = x[0:B, :]                                                          # (B,H)
    q_cls = qkv[0:B, 0:H]                                                      # (B,H), pre-scaled

    # ---- single-head attention restricted to the CLS queries (exact: 1 layer + CLS pool) ----
    scores = jax.lax.dot_general(q_cls, k, (((1,), (1,)), ((), ())),
                                 preferred_element_type=jnp.float32)           # (B,BS)
    rowb = jax.lax.broadcasted_iota(jnp.int32, (B, BS), 0)
    scores = jnp.where(key_b == rowb, scores, -1e9)                            # block-diag + pad mask
    smax = jnp.max(scores, axis=-1, keepdims=True)
    e = jnp.exp(scores - smax)
    attn = e * pl.reciprocal(jnp.sum(e, axis=-1, keepdims=True), approx=True)  # (B,BS)
    ctx = jnp.dot(attn, v, preferred_element_type=jnp.float32)                 # (B,H)

    # ---- output projection + residual LN ----
    attn_out = jnp.dot(ctx.astype(jnp.bfloat16), w_ref[WO_R0:WO_R0 + H, 0:H],
                       preferred_element_type=jnp.float32) + f_ref[R_BO:R_BO + 1, 0:H]
    h1 = _ln(x_cls + attn_out,
             f_ref[R_LN1_G:R_LN1_G + 1, 0:H], f_ref[R_LN1_B:R_LN1_B + 1, 0:H])

    # ---- GELU FFN + residual LN ----
    f1 = jnp.dot(h1.astype(jnp.bfloat16), w_ref[W1_R0:W1_R0 + H, 0:FFN],
                 preferred_element_type=jnp.float32) + f_ref[R_B1:R_B1 + 1, 0:FFN]
    f1 = jax.nn.gelu(f1, approximate=True)  # TODO(synk): HF BERT uses exact erf GELU
    f2 = jnp.dot(f1.astype(jnp.bfloat16), w_ref[W2_R0:W2_R0 + FFN, 0:H],
                 preferred_element_type=jnp.float32) + f_ref[R_B2:R_B2 + 1, 0:H]

    out_ref[...] = _ln(h1 + f2,
                       f_ref[R_LN2_G:R_LN2_G + 1, 0:H], f_ref[R_LN2_B:R_LN2_B + 1, 0:H])


# ----------------------------- wrapper -----------------------------
@jax.jit
def bert_encoder_forward(params, input_ids, attention_mask, token_type_ids):
    """BERT-like encoder forward; returns CLS embeddings (B, H)."""
    B, S = input_ids.shape
    BS = B * S

    # Seq-major flatten (row r = s*B + b): CLS tokens land in rows 0..B-1.
    ids_sm = input_ids.astype(jnp.int32).T.reshape(BS)
    typ_sm = token_type_ids.astype(jnp.int32).T.reshape(BS)
    msk_sm = attention_mask.astype(jnp.int32).T.reshape(BS)
    pos_sm = jnp.repeat(jnp.arange(S, dtype=jnp.int32), B)
    bat_sm = jnp.tile(jnp.arange(B, dtype=jnp.int32), S)

    # Single small i32 tile: absolute embedding-table row indices + key-batch row.
    width = max(BS, 3)
    int_slab = jnp.zeros((BS + 1, width), jnp.int32)
    int_slab = int_slab.at[0:BS, 0].set(ids_sm)                          # token rows
    int_slab = int_slab.at[0:BS, 1].set(VOCAB + pos_sm)                  # position rows
    int_slab = int_slab.at[0:BS, 2].set(VOCAB + MAX_POS + typ_sm)        # type rows
    int_slab = int_slab.at[BS, 0:BS].set(jnp.where(msk_sm > 0, bat_sm, -1))

    vmem = pl.BlockSpec(memory_space=pltpu.MemorySpace.VMEM)
    return pl.pallas_call(
        bert_encoder_kernel,
        out_shape=jax.ShapeDtypeStruct((B, HIDDEN), jnp.float32),
        in_specs=[vmem, vmem, vmem],
        out_specs=vmem,
    )(int_slab, params["w_slab"], params["f_slab"])


# ----------------------------- parameter init -----------------------------
def init_bert_params(key):
    # TODO(synk): real BertModel loads pretrained 12-layer weights; here one deterministic toy layer.
    ks = jax.random.split(key, 7)
    s = 0.02

    def nrm(k, shape):
        return s * jax.random.normal(k, shape, dtype=jnp.float32)

    tok_emb = nrm(ks[0], (VOCAB, HIDDEN))
    pos_emb = nrm(ks[1], (MAX_POS, HIDDEN))
    typ_emb = nrm(ks[2], (N_TYPES, HIDDEN))
    wqkv = nrm(ks[3], (HIDDEN, 3 * HIDDEN))
    wo = nrm(ks[4], (HIDDEN, HIDDEN))
    w1 = nrm(ks[5], (HIDDEN, FFN))
    w2 = nrm(ks[6], (FFN, HIDDEN))

    # Fold the 1/sqrt(H) attention scale into the Q projection (Q bias is zero).
    wqkv = wqkv.at[:, 0:HIDDEN].multiply(1.0 / jnp.sqrt(jnp.float32(HIDDEN)))

    # ---- bf16 weight slab: embedding tables + all matmul weights ----
    w_slab = jnp.zeros((W_ROWS, W_COLS), jnp.bfloat16)

    def put(slab, r0, m):
        return slab.at[r0:r0 + m.shape[0], 0:m.shape[1]].set(m.astype(jnp.bfloat16))

    w_slab = put(w_slab, 0, tok_emb)
    w_slab = put(w_slab, VOCAB, pos_emb)
    w_slab = put(w_slab, VOCAB + MAX_POS, typ_emb)
    w_slab = put(w_slab, QKV_R0, wqkv)
    w_slab = put(w_slab, WO_R0, wo)
    w_slab = put(w_slab, W1_R0, w1)
    w_slab = put(w_slab, W2_R0, w2)

    # ---- f32 vector slab: LN gammas/betas + biases (VPU-side, stays f32) ----
    f_slab = jnp.zeros((F_ROWS, F_COLS), jnp.float32)
    f_slab = f_slab.at[R_EMB_G, 0:HIDDEN].set(1.0)
    f_slab = f_slab.at[R_LN1_G, 0:HIDDEN].set(1.0)
    f_slab = f_slab.at[R_LN2_G, 0:HIDDEN].set(1.0)
    # LN betas and all projection/FFN biases are zero-initialized (rows already 0).

    return {"w_slab": w_slab, "f_slab": f_slab}


# ----------------------------- BertEncoder equivalent -----------------------------
class BertEncoderPallas:
    """Pallas equivalent of BertEncoder.forward: encoder tower -> CLS embedding."""

    def __init__(self, params):
        self.params = params

    def __call__(self, input_ids, attention_mask=None, token_type_ids=None):
        if attention_mask is None:
            attention_mask = jnp.ones_like(input_ids)
        if token_type_ids is None:
            token_type_ids = jnp.zeros_like(input_ids)
        return bert_encoder_forward(self.params, input_ids, attention_mask, token_type_ids)


# ----------------------------- main -----------------------------
if __name__ == "__main__":
    key = jax.random.PRNGKey(0)
    k_param, k_ids = jax.random.split(key, 2)

    encoder = BertEncoderPallas(init_bert_params(k_param))

    input_ids = jax.random.randint(k_ids, (BATCH, SEQ), 0, VOCAB, dtype=jnp.int32)
    attention_mask = jnp.concatenate(
        [jnp.ones((BATCH, SEQ - 2), jnp.int32), jnp.zeros((BATCH, 2), jnp.int32)], axis=1)
    token_type_ids = jnp.zeros((BATCH, SEQ), jnp.int32)

    emb = encoder(input_ids, attention_mask, token_type_ids)
    jax.block_until_ready(emb)

    assert emb.shape == (BATCH, HIDDEN)
    assert bool(jnp.all(jnp.isfinite(emb)))
    print("KERNEL_OK")
</pallas_src>

<mosaic_0001>
module attributes {stable_mosaic.version = 11 : i64} {
  func.func @bert_encoder_kernel(%arg0: memref<17x16xi32, #tpu.memory_space<vmem>>, %arg1: memref<320x128xbf16, #tpu.memory_space<vmem>>, %arg2: memref<10x128xf32, #tpu.memory_space<vmem>>, %arg3: memref<2x32xf32, #tpu.memory_space<vmem>>) attributes {dimension_semantics = [], scalar_prefetch = 0 : i64, scratch_operands = 0 : i64, tpu.core_type = #tpu.core_type<tc>} {
    %c0 = arith.constant 0 : index
    %c0_0 = arith.constant 0 : index
    %0 = vector.load %arg0[%c0, %c0_0] : memref<17x16xi32, #tpu.memory_space<vmem>>, vector<16x1xi32>
    %c0_1 = arith.constant 0 : index
    %c1 = arith.constant 1 : index
    %1 = vector.load %arg0[%c0_1, %c1] : memref<17x16xi32, #tpu.memory_space<vmem>>, vector<16x1xi32>
    %c0_2 = arith.constant 0 : index
    %c2 = arith.constant 2 : index
    %2 = vector.load %arg0[%c0_2, %c2] : memref<17x16xi32, #tpu.memory_space<vmem>>, vector<16x1xi32>
    %c16 = arith.constant 16 : index
    %c0_3 = arith.constant 0 : index
    %3 = vector.load %arg0[%c16, %c0_3] : memref<17x16xi32, #tpu.memory_space<vmem>>, vector<1x16xi32>
    %4 = tpu.iota {dimensions = array<i32: 1>} : vector<16x160xi32>
    %5 = vector.broadcast %0 : vector<16x1xi32> to vector<16x160xi32>
    %6 = arith.cmpi eq, %4, %5 : vector<16x160xi32>
    %7 = vector.broadcast %1 : vector<16x1xi32> to vector<16x160xi32>
    %8 = arith.cmpi eq, %4, %7 : vector<16x160xi32>
    %9 = arith.ori %6, %8 : vector<16x160xi1>
    %10 = vector.broadcast %2 : vector<16x1xi32> to vector<16x160xi32>
    %11 = arith.cmpi eq, %4, %10 : vector<16x160xi32>
    %12 = arith.ori %9, %11 : vector<16x160xi1>
    %13 = arith.extui %12 : vector<16x160xi1> to vector<16x160xi32>
    %14 = arith.sitofp %13 : vector<16x160xi32> to vector<16x160xf32>
    %15 = arith.truncf %14 : vector<16x160xf32> to vector<16x160xbf16>
    %c0_4 = arith.constant 0 : index
    %c0_5 = arith.constant 0 : index
    %16 = vector.load %arg1[%c0_4, %c0_5] : memref<320x128xbf16, #tpu.memory_space<vmem>>, vector<160x32xbf16>
    %cst = arith.constant dense<0.000000e+00> : vector<16x32xf32>
    %17 = tpu.matmul %15, %16, %cst {dimension_numbers = #tpu.dot_dimension_numbers<[1], [0], [0], [1], [0, 0, 1, 1], [], []>} : vector<16x160xbf16>, vector<160x32xbf16>, vector<16x32xf32> -> vector<16x32xf32>
    %c0_6 = arith.constant 0 : index
    %c0_7 = arith.constant 0 : index
    %18 = vector.load %arg2[%c0_6, %c0_7] : memref<10x128xf32, #tpu.memory_space<vmem>>, vector<1x32xf32>
    %c1_8 = arith.constant 1 : index
    %c0_9 = arith.constant 0 : index
    %19 = vector.load %arg2[%c1_8, %c0_9] : memref<10x128xf32, #tpu.memory_space<vmem>>, vector<1x32xf32>
    %cst_10 = arith.constant dense<0.000000e+00> : vector<16xf32>
    %20 = vector.multi_reduction <add>, %17, %cst_10 [1] : vector<16x32xf32> to vector<16xf32>
    %21 = vector.shape_cast %20 : vector<16xf32> to vector<16x1xf32>
    %cst_11 = arith.constant 3.200000e+01 : f32
    %22 = vector.broadcast %cst_11 : f32 to vector<16x1xf32>
    %23 = arith.divf %21, %22 : vector<16x1xf32>
    %24 = vector.broadcast %23 : vector<16x1xf32> to vector<16x32xf32>
    %25 = arith.subf %17, %24 : vector<16x32xf32>
    %26 = arith.mulf %25, %25 : vector<16x32xf32>
    %cst_12 = arith.constant dense<0.000000e+00> : vector<16xf32>
    %27 = vector.multi_reduction <add>, %26, %cst_12 [1] : vector<16x32xf32> to vector<16xf32>
    %28 = vector.shape_cast %27 : vector<16xf32> to vector<16x1xf32>
    %cst_13 = arith.constant 3.200000e+01 : f32
    %29 = vector.broadcast %cst_13 : f32 to vector<16x1xf32>
    %30 = arith.divf %28, %29 : vector<16x1xf32>
    %cst_14 = arith.constant 9.99999996E-13 : f32
    %31 = vector.broadcast %cst_14 : f32 to vector<16x1xf32>
    %32 = arith.addf %30, %31 : vector<16x1xf32>
    %33 = math.rsqrt %32 : vector<16x1xf32>
    %34 = vector.broadcast %33 : vector<16x1xf32> to vector<16x32xf32>
    %35 = arith.mulf %25, %34 : vector<16x32xf32>
    %36 = vector.broadcast %18 : vector<1x32xf32> to vector<16x32xf32>
    %37 = arith.mulf %35, %36 : vector<16x32xf32>
    %38 = vector.broadcast %19 : vector<1x32xf32> to vector<16x32xf32>
    %39 = arith.addf %37, %38 : vector<16x32xf32>
    %40 = arith.truncf %39 : vector<16x32xf32> to vector<16x32xbf16>
    %c160 = arith.constant 160 : index
    %c0_15 = arith.constant 0 : index
    %41 = vector.load %arg1[%c160, %c0_15] : memref<320x128xbf16, #tpu.memory_space<vmem>>, vector<32x96xbf16>
    %cst_16 = arith.constant dense<0.000000e+00> : vector<16x96xf32>
    %42 = tpu.matmul %40, %41, %cst_16 {dimension_numbers = #tpu.dot_dimension_numbers<[1], [0], [0], [1], [0, 0, 1, 1], [], []>} : vector<16x32xbf16>, vector<32x96xbf16>, vector<16x96xf32> -> vector<16x96xf32>
    %c8 = arith.constant 8 : index
    %c0_17 = arith.constant 0 : index
    %43 = vector.load %arg2[%c8, %c0_17] : memref<10x128xf32, #tpu.memory_space<vmem>>, vector<1x96xf32>
    %44 = vector.broadcast %43 : vector<1x96xf32> to vector<16x96xf32>
    %45 = arith.addf %42, %44 : vector<16x96xf32>
    %46 = vector.extract_strided_slice %45 {offsets = [0, 32], sizes = [16, 32], strides = [1, 1]} : vector<16x96xf32> to vector<16x32xf32>
    %47 = vector.extract_strided_slice %45 {offsets = [0, 64], sizes = [16, 32], strides = [1, 1]} : vector<16x96xf32> to vector<16x32xf32>
    %48 = vector.extract_strided_slice %39 {offsets = [0, 0], sizes = [2, 32], strides = [1, 1]} : vector<16x32xf32> to vector<2x32xf32>
    %49 = vector.extract_strided_slice %45 {offsets = [0, 0], sizes = [2, 32], strides = [1, 1]} : vector<16x96xf32> to vector<2x32xf32>
    %cst_18 = arith.constant dense<0.000000e+00> : vector<2x16xf32>
    %50 = tpu.matmul %49, %46, %cst_18 {dimension_numbers = #tpu.dot_dimension_numbers<[1], [1], [0], [0], [0, 0, 1, 0], [], []>} : vector<2x32xf32>, vector<16x32xf32>, vector<2x16xf32> -> vector<2x16xf32>
    %51 = tpu.iota {dimensions = array<i32: 0>} : vector<2x16xi32>
    %52 = vector.broadcast %3 : vector<1x16xi32> to vector<2x16xi32>
    %53 = arith.cmpi eq, %52, %51 : vector<2x16xi32>
    %cst_19 = arith.constant -1.000000e+09 : f32
    %54 = vector.broadcast %cst_19 : f32 to vector<2x16xf32>
    %55 = arith.select %53, %50, %54 : vector<2x16xi1>, vector<2x16xf32>
    %cst_20 = arith.constant dense<0xFF800000> : vector<2xf32>
    %56 = vector.multi_reduction <maximumf>, %55, %cst_20 [1] : vector<2x16xf32> to vector<2xf32>
    %57 = vector.shape_cast %56 : vector<2xf32> to vector<2x1xf32>
    %58 = vector.broadcast %57 : vector<2x1xf32> to vector<2x16xf32>
    %59 = arith.subf %55, %58 : vector<2x16xf32>
    %60 = math.exp %59 : vector<2x16xf32>
    %cst_21 = arith.constant dense<0.000000e+00> : vector<2xf32>
    %61 = vector.multi_reduction <add>, %60, %cst_21 [1] : vector<2x16xf32> to vector<2xf32>
    %62 = vector.shape_cast %61 : vector<2xf32> to vector<2x1xf32>
    %63 = tpu.reciprocal %62 {approx = true} : vector<2x1xf32> -> vector<2x1xf32>
    %64 = vector.broadcast %63 : vector<2x1xf32> to vector<2x16xf32>
    %65 = arith.mulf %60, %64 : vector<2x16xf32>
    %cst_22 = arith.constant dense<0.000000e+00> : vector<2x32xf32>
    %66 = tpu.matmul %65, %47, %cst_22 {dimension_numbers = #tpu.dot_dimension_numbers<[1], [0], [0], [1], [0, 0, 1, 1], [], []>} : vector<2x16xf32>, vector<16x32xf32>, vector<2x32xf32> -> vector<2x32xf32>
    %67 = arith.truncf %66 : vector<2x32xf32> to vector<2x32xbf16>
    %c192 = arith.constant 192 : index
    %c0_23 = arith.constant 0 : index
    %68 = vector.load %arg1[%c192, %c0_23] : memref<320x128xbf16, #tpu.memory_space<vmem>>, vector<32x32xbf16>
    %cst_24 = arith.constant dense<0.000000e+00> : vector<2x32xf32>
    %69 = tpu.matmul %67, %68, %cst_24 {dimension_numbers = #tpu.dot_dimension_numbers<[1], [0], [0], [1], [0, 0, 1, 1], [], []>} : vector<2x32xbf16>, vector<32x32xbf16>, vector<2x32xf32> -> vector<2x32xf32>
    %c2_25 = arith.constant 2 : index
    %c0_26 = arith.constant 0 : index
    %70 = vector.load %arg2[%c2_25, %c0_26] : memref<10x128xf32, #tpu.memory_space<vmem>>, vector<1x32xf32>
    %71 = vector.broadcast %70 : vector<1x32xf32> to vector<2x32xf32>
    %72 = arith.addf %69, %71 : vector<2x32xf32>
    %73 = arith.addf %48, %72 : vector<2x32xf32>
    %c3 = arith.constant 3 : index
    %c0_27 = arith.constant 0 : index
    %74 = vector.load %arg2[%c3, %c0_27] : memref<10x128xf32, #tpu.memory_space<vmem>>, vector<1x32xf32>
    %c4 = arith.constant 4 : index
    %c0_28 = arith.constant 0 : index
    %75 = vector.load %arg2[%c4, %c0_28] : memref<10x128xf32, #tpu.memory_space<vmem>>, vector<1x32xf32>
    %cst_29 = arith.constant dense<0.000000e+00> : vector<2xf32>
    %76 = vector.multi_reduction <add>, %73, %cst_29 [1] : vector<2x32xf32> to vector<2xf32>
    %77 = vector.shape_cast %76 : vector<2xf32> to vector<2x1xf32>
    %cst_30 = arith.constant 3.200000e+01 : f32
    %78 = vector.broadcast %cst_30 : f32 to vector<2x1xf32>
    %79 = arith.divf %77, %78 : vector<2x1xf32>
    %80 = vector.broadcast %79 : vector<2x1xf32> to vector<2x32xf32>
    %81 = arith.subf %73, %80 : vector<2x32xf32>
    %82 = arith.mulf %81, %81 : vector<2x32xf32>
    %cst_31 = arith.constant dense<0.000000e+00> : vector<2xf32>
    %83 = vector.multi_reduction <add>, %82, %cst_31 [1] : vector<2x32xf32> to vector<2xf32>
    %84 = vector.shape_cast %83 : vector<2xf32> to vector<2x1xf32>
    %cst_32 = arith.constant 3.200000e+01 : f32
    %85 = vector.broadcast %cst_32 : f32 to vector<2x1xf32>
    %86 = arith.divf %84, %85 : vector<2x1xf32>
    %cst_33 = arith.constant 9.99999996E-13 : f32
    %87 = vector.broadcast %cst_33 : f32 to vector<2x1xf32>
    %88 = arith.addf %86, %87 : vector<2x1xf32>
    %89 = math.rsqrt %88 : vector<2x1xf32>
    %90 = vector.broadcast %89 : vector<2x1xf32> to vector<2x32xf32>
    %91 = arith.mulf %81, %90 : vector<2x32xf32>
    %92 = vector.broadcast %74 : vector<1x32xf32> to vector<2x32xf32>
    %93 = arith.mulf %91, %92 : vector<2x32xf32>
    %94 = vector.broadcast %75 : vector<1x32xf32> to vector<2x32xf32>
    %95 = arith.addf %93, %94 : vector<2x32xf32>
    %96 = arith.truncf %95 : vector<2x32xf32> to vector<2x32xbf16>
    %c224 = arith.constant 224 : index
    %c0_34 = arith.constant 0 : index
    %97 = vector.load %arg1[%c224, %c0_34] : memref<320x128xbf16, #tpu.memory_space<vmem>>, vector<32x64xbf16>
    %cst_35 = arith.constant dense<0.000000e+00> : vector<2x64xf32>
    %98 = tpu.matmul %96, %97, %cst_35 {dimension_numbers = #tpu.dot_dimension_numbers<[1], [0], [0], [1], [0, 0, 1, 1], [], []>} : vector<2x32xbf16>, vector<32x64xbf16>, vector<2x64xf32> -> vector<2x64xf32>
    %c9 = arith.constant 9 : index
    %c0_36 = arith.constant 0 : index
    %99 = vector.load %arg2[%c9, %c0_36] : memref<10x128xf32, #tpu.memory_space<vmem>>, vector<1x64xf32>
    %100 = vector.broadcast %99 : vector<1x64xf32> to vector<2x64xf32>
    %101 = arith.addf %98, %100 : vector<2x64xf32>
    %102 = arith.mulf %101, %101 : vector<2x64xf32>
    %103 = arith.mulf %101, %102 : vector<2x64xf32>
    %cst_37 = arith.constant 4.471500e-02 : f32
    %104 = vector.broadcast %cst_37 : f32 to vector<2x64xf32>
    %105 = arith.mulf %104, %103 : vector<2x64xf32>
    %106 = arith.addf %101, %105 : vector<2x64xf32>
    %cst_38 = arith.constant 0.797884583 : f32
    %107 = vector.broadcast %cst_38 : f32 to vector<2x64xf32>
    %108 = arith.mulf %107, %106 : vector<2x64xf32>
    %109 = math.tanh %108 : vector<2x64xf32>
    %cst_39 = arith.constant 1.000000e+00 : f32
    %110 = vector.broadcast %cst_39 : f32 to vector<2x64xf32>
    %111 = arith.addf %110, %109 : vector<2x64xf32>
    %cst_40 = arith.constant 5.000000e-01 : f32
    %112 = vector.broadcast %cst_40 : f32 to vector<2x64xf32>
    %113 = arith.mulf %112, %111 : vector<2x64xf32>
    %114 = arith.mulf %101, %113 : vector<2x64xf32>
    %115 = arith.truncf %114 : vector<2x64xf32> to vector<2x64xbf16>
    %c256 = arith.constant 256 : index
    %c0_41 = arith.constant 0 : index
    %116 = vector.load %arg1[%c256, %c0_41] : memref<320x128xbf16, #tpu.memory_space<vmem>>, vector<64x32xbf16>
    %cst_42 = arith.constant dense<0.000000e+00> : vector<2x32xf32>
    %117 = tpu.matmul %115, %116, %cst_42 {dimension_numbers = #tpu.dot_dimension_numbers<[1], [0], [0], [1], [0, 0, 1, 1], [], []>} : vector<2x64xbf16>, vector<64x32xbf16>, vector<2x32xf32> -> vector<2x32xf32>
    %c5 = arith.constant 5 : index
    %c0_43 = arith.constant 0 : index
    %118 = vector.load %arg2[%c5, %c0_43] : memref<10x128xf32, #tpu.memory_space<vmem>>, vector<1x32xf32>
    %119 = vector.broadcast %118 : vector<1x32xf32> to vector<2x32xf32>
    %120 = arith.addf %117, %119 : vector<2x32xf32>
    %121 = arith.addf %95, %120 : vector<2x32xf32>
    %c6 = arith.constant 6 : index
    %c0_44 = arith.constant 0 : index
    %122 = vector.load %arg2[%c6, %c0_44] : memref<10x128xf32, #tpu.memory_space<vmem>>, vector<1x32xf32>
    %c7 = arith.constant 7 : index
    %c0_45 = arith.constant 0 : index
    %123 = vector.load %arg2[%c7, %c0_45] : memref<10x128xf32, #tpu.memory_space<vmem>>, vector<1x32xf32>
    %cst_46 = arith.constant dense<0.000000e+00> : vector<2xf32>
    %124 = vector.multi_reduction <add>, %121, %cst_46 [1] : vector<2x32xf32> to vector<2xf32>
    %125 = vector.shape_cast %124 : vector<2xf32> to vector<2x1xf32>
    %cst_47 = arith.constant 3.200000e+01 : f32
    %126 = vector.broadcast %cst_47 : f32 to vector<2x1xf32>
    %127 = arith.divf %125, %126 : vector<2x1xf32>
    %128 = vector.broadcast %127 : vector<2x1xf32> to vector<2x32xf32>
    %129 = arith.subf %121, %128 : vector<2x32xf32>
    %130 = arith.mulf %129, %129 : vector<2x32xf32>
    %cst_48 = arith.constant dense<0.000000e+00> : vector<2xf32>
    %131 = vector.multi_reduction <add>, %130, %cst_48 [1] : vector<2x32xf32> to vector<2xf32>
    %132 = vector.shape_cast %131 : vector<2xf32> to vector<2x1xf32>
    %cst_49 = arith.constant 3.200000e+01 : f32
    %133 = vector.broadcast %cst_49 : f32 to vector<2x1xf32>
    %134 = arith.divf %132, %133 : vector<2x1xf32>
    %cst_50 = arith.constant 9.99999996E-13 : f32
    %135 = vector.broadcast %cst_50 : f32 to vector<2x1xf32>
    %136 = arith.addf %134, %135 : vector<2x1xf32>
    %137 = math.rsqrt %136 : vector<2x1xf32>
    %138 = vector.broadcast %137 : vector<2x1xf32> to vector<2x32xf32>
    %139 = arith.mulf %129, %138 : vector<2x32xf32>
    %140 = vector.broadcast %122 : vector<1x32xf32> to vector<2x32xf32>
    %141 = arith.mulf %139, %140 : vector<2x32xf32>
    %142 = vector.broadcast %123 : vector<1x32xf32> to vector<2x32xf32>
    %143 = arith.addf %141, %142 : vector<2x32xf32>
    %c0_51 = arith.constant 0 : index
    %c0_52 = arith.constant 0 : index
    %144 = vector.load %arg3[%c0_51, %c0_52] : memref<2x32xf32, #tpu.memory_space<vmem>>, vector<2x32xf32>
    tpu.vector_store %arg3[%c0_51, %c0_52], %143 {strides = array<i32>} : memref<2x32xf32, #tpu.memory_space<vmem>>, vector<2x32xf32>,
    return
  }
}

</mosaic_0001>

<bundles_post_ra>
// kernel: bert_encoder_forward.1
= control target key start
LH: loop header
LB: loop body
LE: loop exit
PB: predicated region body
PF: predicated region fallthrough
CT: control target
= control target key end

     0   :  { %v958_v2 = vmov 1   ;;  %v959_v3 = vmov 0   ;;  %v960_v7 = vmov 2   ;;  %v961_v9 = vmov 0.0   ;;  %s1145_s0 = inlined_call_operand.vmem [shape: s32[17,16], index: 0, kind: input, shape index: {}]   ;;  %s1146_s1 = inlined_call_operand.vmem [shape: bf16[320,128], index: 1, kind: input, shape index: {}]   ;;  %s1147_s2 = inlined_call_operand.vmem [shape: f32[10,128], index: 2, kind: input, shape index: {}]   ;;  %s1148_s3 = inlined_call_operand.hbm [shape: f32[2,32], index: 3, kind: output, shape index: {}]  }
   0x1   :  { %v16_v0 = vld [vmem:[%s1145_s0] sm:$0xff]  ;;  %v902_v1 = vld [vmem:[%s1146_s1 + $0x38] sm:$0xff]   ;;  %899 = vset.pattern.permute.xlu1 %v958_v2  ;;  %898 = vset.pattern.permute.xlu0 %v959_v3  ;;  %v17_v4 = vld [vmem:[%s1145_s0 + $0x8] sm:$0xff] }
   0x2   :  { %33 = vperm.xlu1 %899, %v16_v0   ;;  %23 = vperm.xlu0 %898, %v16_v0   ;;  %v903_v5 = vld [vmem:[%s1146_s1 + $0x30] sm:$0xff]   ;;  %v904_v6 = vld [vmem:[%s1146_s1 + $0x28] sm:$0xff]   ;;  %v905_v8 = vld [vmem:[%s1146_s1 + $0x20] sm:$0xff]  }
   0x3   :  { %154 = vmatprep.subr.bf16.mxu0 %v959_v3  ;;  %847 = vmatprep.subr.mxu1 %v961_v9  ;;  %v906_v10 = vld [vmem:[%s1146_s1 + $0x18] sm:$0xff]  }
   0x4   :  { %155 = vmatpush1.bf16.msra.mxu0 %v902_v1 }
   0x5   :  { %156 = vmatprep.subr.bf16.mxu0 %v959_v3 }
   0x6   :  { %36 = vperm.xlu1 %899, %v17_v4   ;;  %26 = vperm.xlu0 %898, %v17_v4  }
   0x8   :  { %157 = vmatpush1.bf16.msra.mxu0 %v903_v5 }
   0x9   :  { %158 = vmatprep.subr.bf16.mxu0 %v959_v3 }
   0xa   :  { %901 = vset.pattern.permute.xlu1 %v960_v7  ;;  %900 = vset.pattern.permute.xlu0 %v960_v7 }
   0xb   :  { %50 = vperm.xlu1 %901, %v17_v4   ;;  %47 = vperm.xlu0 %900, %v16_v0  }
   0xc   :  { %159 = vmatpush1.bf16.msra.mxu0 %v904_v6 }
   0xd   :  { %160 = vmatprep.subr.bf16.mxu0 %v959_v3 }
  0x10   :  { %161 = vmatpush1.bf16.msra.mxu0 %v905_v8 }
  0x11   :  { %162 = vmatprep.subr.bf16.mxu0 %v959_v3 }
  0x12   :  { %8 = vsyncpa [#allocation3], 0  ;;  %v907_v11 = vld [vmem:[%s1146_s1 + $0x10] sm:$0xff]   ;;  %v908_v12 = vld [vmem:[%s1146_s1 + $0x8] sm:$0xff]   ;;  %v19_v16 = vlaneseq  ;;  %v1149_v23 = vmov 0  ;;  %s964_s19 = smov 96  }
  0x13   :  { %v909_v13 = vld [vmem:[%s1146_s1] sm:$0xff]   ;;  %v910_v14 = vld [vmem:[%s1146_s1 + $0x48] sm:$0xff]   ;;  %v962_v29 = vmov 1.0|1.0   ;;  %v912_v46 = vld [vmem:[%s1146_s1 + $0x58] sm:$0xff]   ;;  %s965_s22 = smov 64  }
  0x14   :  { %163 = vmatpush1.bf16.msra.mxu0 %v906_v10  ;;  %v911_v15 = vld [vmem:[%s1146_s1 + $0x40] sm:$0xff]   ;;  %v20_v17 = vand.u32 127, %v19_v16  ;;  %v913_v47 = vld [vmem:[%s1146_s1 + $0x50] sm:$0xff]   ;;  %v792_v1 = vld [vmem:[%s1147_s2 + $0x8] ss:$0 sm:$0xff]  ;;  %s966_s23 = smov [#allocation2]  }
  0x15   :  { %164 = vmatprep.subr.bf16.mxu0 %v959_v3  ;;  %v790_v56 = vld [vmem:[%s1147_s2] ss:$0 sm:$0xff]  ;;  %v791_v60 = vld [vmem:[%s1147_s2 + $0x1] ss:$0 sm:$0xff]  ;;  %s765_s24 = sshll.u32 %s966_s23, 4  ;;  %s766_s24 = int_to_ptr.vmem [resolvable:$true] %s765_s24 }
  0x16   :  { %v21_v20 = vadd.s32 128, %v20_v17  ;;  %s936_s25 = scalar_lea.vmem %s766_s24, 32  ;;  %p941_p1 = scmp.lt.s32.totalorder %s766_s24, %s766_s24 }
  0x17   :  { %p937_p0 = scmp.ne.s32.totalorder %s766_s24, %s936_s25  ;;  %p942_p2 = scmp.lt.s32.totalorder %s936_s25, %s936_s25 }
  0x18   :  { %165 = vmatpush1.bf16.msra.mxu0 %v907_v11  ;;  %v385_v11 = vshrl.u32 %v19_v16, 7 }
  0x19   :  { %166 = vmatprep.subr.bf16.mxu0 %v959_v3  ;;  %p943_p3 = por %p942_p2, %p941_p1 }
  0x1b   :  { %p944_p4 = pnand %p943_p3, %p937_p0 }
  0x1c   :  { %167 = vmatpush1.bf16.msra.mxu0 %v908_v12  ;;  %v799_v12 = vld [vmem:[%s1145_s0 + $0x10] ss:$0 sm:$0xff] }
  0x1d   :  { %168 = vmatprep.subr.bf16.mxu0 %v959_v3 }
  0x20   :  { %169 = vmatpush1.bf16.msra.mxu0 %v909_v13 }
  0x21   :  { %182 = vmatprep.subr.bf16.mxu0 %v959_v3 }
  0x24   :  { %183 = vmatpush2.bf16.msra.mxu0 %v910_v14 }
  0x25   :  { %184 = vmatprep.subr.bf16.mxu0 %v959_v3 }
  0x28   :  { %185 = vmatpush2.bf16.msra.mxu0 %v911_v15 }
  0x29   :  { %839 = vmatprep.subr.bf16.mxu0 %v961_v9 }
  0x7d   :  { %v34_v18 = vpop.permute.xlu1 %33  ;;  %v24_v19 = vpop.permute.xlu0 %23 }
  0x7e   :  { %vm38_vm0 = vcmp.eq.s32.totalorder %v20_v17, %v34_v18  ;;  %vm28_vm1 = vcmp.eq.s32.totalorder %v20_v17, %v24_v19  ;;  %vm39_vm2 = vcmp.eq.s32.totalorder %v21_v20, %v34_v18  ;;  %vm29_vm3 = vcmp.eq.s32.totalorder %v21_v20, %v24_v19 }
  0x7f   :  { %vm1026_vm6 = vmor %vm28_vm1, %vm38_vm0 }
  0x80   :  { %v1150_v23 = vsel %vm1026_vm6, 4294967295, %v1149_v23  ;;  %vm43_vm9 = vmor %vm29_vm3, %vm39_vm2 }
  0x81   :  { %v37_v21 = vpop.permute.xlu1 %36  ;;  %v27_v22 = vpop.permute.xlu0 %26  ;;  %vm1151_vm2 = vnez %v1150_v23 }
  0x82   :  { %vm40_vm4 = vcmp.eq.s32.totalorder %v20_v17, %v37_v21  ;;  %vm30_vm5 = vcmp.eq.s32.totalorder %v20_v17, %v27_v22  ;;  %vm41_vm7 = vcmp.eq.s32.totalorder %v21_v20, %v37_v21  ;;  %vm31_vm8 = vcmp.eq.s32.totalorder %v21_v20, %v27_v22 }
  0x83   :  { %vm44_vm10 = vmor %vm30_vm5, %vm40_vm4  ;;  %vm150_vm4 = vcmask 261120  }
  0x84   :  { %vm45_vm13 = vmor %vm31_vm8, %vm41_vm7  ;;  %vm390_vm7 = vcmp.eq.s32.totalorder %v799_v12, %v385_v11  ;;  %vm392_vm8 = vcmask 123904  }
  0x86   :  { %v51_v24 = vpop.permute.xlu1 %50  ;;  %v48_v25 = vpop.permute.xlu0 %47 }
  0x87   :  { %vm54_vm11 = vcmp.eq.s32.totalorder %v20_v17, %v51_v24  ;;  %vm55_vm12 = vcmp.eq.s32.totalorder %v21_v20, %v51_v24  ;;  %vm53_vm14 = vcmp.eq.s32.totalorder %v21_v20, %v48_v25  ;;  %vm52_vm0 = vcmp.eq.s32.totalorder %v20_v17, %v48_v25 }
  0x88   :  { %vm59_vm15 = vmor %vm45_vm13, %vm55_vm12 }
  0x89   :  { %vm58_vm1 = vmor %vm44_vm10, %vm54_vm11  ;;  %v776_v26 = vsel %vm59_vm15, 1.0, %v961_v9  ;;  %vm552_vm10 = vcmask 254976   ;;  %vm688_vm11 = vcmask 523264  }
  0x8a   :  { %vm57_vm6 = vmor %vm43_vm9, %vm53_vm14  ;;  %vm410_vm9 = vcmask 130048  }
  0x8b   :  { %vm56_vm3 = vmor %vm1151_vm2, %vm52_vm0  ;;  %v774_v27 = vsel %vm57_vm6, 1.0, %v961_v9  ;;  %vm963_vm6 = vmmov 0  }
  0x8c   :  { %v69_v28 = vpack.c.bf16 %v776_v26, %v774_v27  ;;  %vm788_vm5 = vmpackc.low %vm58_vm1, %vm56_vm3  ;;  %851 = vmatprep.mubr.msk.f32.mxu1 %vm963_vm6, %v961_v9  ;;  %v914_v26 = vld [vmem:[%s1146_s1 + $0x68] sm:$0xff]  }
  0x8e   :  { %787 = vmatprep.mubr.msk.bf16.mxu0 %vm150_vm4, %v69_v28  ;;  %v915_v28 = vld [vmem:[%s1146_s1 + $0x60] sm:$0xff]  }
  0x8f   :  { %789 = vmatmul.mubr.msk.bf16.vlgmr.msra.gmra.mxu0 %vm788_vm5, %v962_v29 }
  0x90   :  { %840 = vmatpush3.bf16.msra.mxu0 %v912_v46  ;;  %843 = vmatprep.mubr.msk.bf16.mxu0 %vm963_vm6, %v961_v9  ;;  %v917_v46 = vld [vmem:[%s1146_s1 + $0x70] sm:$0xff]  }
  0x91   :  { %841 = vmatprep.subr.bf16.mxu0 %v961_v9 }
  0x94   :  { %842 = vmatpush3.bf16.msra.mxu0 %v913_v47 }
 0x14f   :  { %v188_v30 = vpop.f32.mrf.mxu0 }
 0x150   :  { %v197_v31 = vsel %vm150_vm4, %v188_v30, 0.0 }
 0x151   :  { %198 = vadd.xlane.f32.xlu1 %v197_v31  ;;  %v190_v32 = vpop.f32.mrf.mxu0 }
 0x152   :  { %v801_v32 = vld [vmem:[%s1147_s2 + $0x2] ss:$0 sm:$0xff] }
 0x153   :  { %v191_v33 = vpop.f32.mrf.mxu0 }
 0x154   :  { %v200_v34 = vsel %vm150_vm4, %v191_v33, 0.0 }
 0x155   :  { %201 = vadd.xlane.f32.xlu0 %v200_v34  ;;  %v193_v35 = vpop.f32.mrf.mxu0 }
 0x1da   :  { %v199_v36 = vpop.xlane.xlu1 %198 }
 0x1db   :  { %v204_v37 = vmul.f32 0.03125, %v199_v36 }
 0x1dd   :  { %v206_v38 = vsub.f32 %v188_v30, %v204_v37 }
 0x1de   :  { %v202_v39 = vpop.xlane.xlu0 %201 }
 0x1df   :  { %v205_v40 = vmul.f32 0.03125, %v202_v39  ;;  %v208_v41 = vmul.f32 %v206_v38, %v206_v38 }
 0x1e1   :  { %v207_v42 = vsub.f32 %v191_v33, %v205_v40  ;;  %v210_v43 = vsel %vm150_vm4, %v208_v41, 0.0 }
 0x1e2   :  { %211 = vadd.xlane.f32.xlu0 %v210_v43 }
 0x1e3   :  { %v209_v44 = vmul.f32 %v207_v42, %v207_v42 }
 0x1e5   :  { %v213_v45 = vsel %vm150_vm4, %v209_v44, 0.0 }
 0x1e6   :  { %214 = vadd.xlane.f32.xlu1 %v213_v45  ;;  %v916_v45 = vld [vmem:[%s1146_s1 + $0x78] sm:$0xff]  }
 0x26b   :  { %v212_v48 = vpop.xlane.xlu0 %211 }
 0x26c   :  { %v216_v49 = vmul.f32 0.03125, %v212_v48 }
 0x26e   :  { %v218_v50 = vadd.f32 1e-12, %v216_v49 }
 0x26f   :  { %v215_v51 = vpop.xlane.xlu1 %214 }
 0x270   :  { %922 = vrsqrt.f32 %v218_v50  ;;  %v217_v52 = vmul.f32 0.03125, %v215_v51  ;;  %v805_v51 = vld [vmem:[%s1147_s2 + $0x3] ss:$0 sm:$0xff] }
 0x272   :  { %v219_v53 = vadd.f32 1e-12, %v217_v52 }
 0x274   :  { %924 = vrsqrt.f32 %v219_v53  ;;  %v806_v53 = vld [vmem:[%s1147_s2 + $0x4] ss:$0 sm:$0xff] }
 0x27d   :  { %v923_v54 = vpop.eup %922 }
 0x27e   :  { %v222_v55 = vmul.f32 %v923_v54, %v206_v38 }
 0x280   :  { %v228_v59 = vmul.f32 %v790_v56, %v222_v55 }
 0x281   :  { %v925_v57 = vpop.eup %924 }
 0x282   :  { %v223_v58 = vmul.f32 %v925_v57, %v207_v42  ;;  %v1056_v62 = vadd.f32 %v791_v60, %v228_v59  ;;  %v918_v57 = vld [vmem:[%s1146_s1 + $0x98] sm:$0xff]   ;;  %v920_v59 = vld [vmem:[%s1146_s1 + $0x88] sm:$0xff]  }
 0x284   :  { %v229_v61 = vmul.f32 %v790_v56, %v223_v58  ;;  %v919_v58 = vld [vmem:[%s1146_s1 + $0x90] sm:$0xff]  }
 0x286   :  { %v235_v63 = vadd.f32 %v791_v60, %v229_v61  ;;  %v921_v60 = vld [vmem:[%s1146_s1 + $0x80] sm:$0xff]   ;;  %v807_v61 = vld [vmem:[%s1147_s2 + $0x9] ss:$0 sm:$0xff] }
 0x288   :  { %v236_v0 = vpack.c.bf16 %v235_v63, %v1056_v62 }
 0x28a   :  { %844 = vmatmul.mubr.msk.bf16.vlgmr.msra.gmra.mxu0 %vm150_vm4, %v236_v0 }
 0x34a   :  { %v295_v2 = vpop.f32.mrf.mxu0 }
 0x34b   :  { %v296_v3 = vadd.f32 %v792_v1, %v295_v2 }
 0x34c   :  { %v845_v4 = vpop.f32.mrf.mxu0 }
 0x34d   :  { %304 = vrot.lane.b32.xlu1 %v296_v3, %s964_s19 }
 0x34e   :  { %v298_v5 = vpop.f32.mrf.mxu0 }
 0x34f   :  { %v299_v6 = vadd.f32 %v792_v1, %v298_v5 }
 0x350   :  { %v846_v7 = vpop.f32.mrf.mxu0 }
 0x351   :  { %306 = vrot.lane.b32.xlu0 %v299_v6, %s964_s19 }
 0x3bf   :  { %v305_v10 = vpop.permute.xlu1 %304 }
 0x3c3   :  { %v307_v8 = vpop.permute.xlu0 %306 }
 0x3c4   :  { %848 = vmatpush3.xpose.msk.msra.mxu1 %vm150_vm4, %v307_v8 }
 0x3c5   :  { %849 = vmatprep.subr.mxu1 %v961_v9 }
 0x3c8   :  { %850 = vmatpush3.xpose.msk.msra.mxu1 %vm150_vm4, %v305_v10 }
 0x3c9   :  { %854 = vmatprep.subr.mxu1 %v961_v9 }
 0x3cb   :  { %852 = vmatmul.mubr.msk.f32.vlgmr.msra.gmra.mxu1 %vm150_vm4, %v296_v3 }
 0x3cc   :  { %858 = vmatprep.mubr.msk.f32.mxu1 %vm963_vm6, %v961_v9 }
 0x48b   :  { %v380_v13 = vpop.f32.mrf.mxu1 }
 0x48c   :  { %v391_v14 = vsel %vm390_vm7, %v380_v13, -1e+09  ;;  %v811_v13 = vld [vmem:[%s1147_s2 + $0x5] ss:$0 sm:$0xff] }
 0x48d   :  { %v853_v15 = vpop.f32.mrf.mxu1  ;;  %v393_v17 = vsel %vm392_vm8, %v391_v14, -inf }
 0x48e   :  { %394 = vmax.xlane.f32.xlu1 %v393_v17 }
 0x49f   :  { %404 = vrot.lane.b32.xlu1 %v296_v3, %s965_s22 }
 0x517   :  { %v395_v18 = vpop.xlane.xlu1 %394 }
 0x518   :  { %v396_v19 = vsub.f32 %v391_v14, %v395_v18 }
 0x51a   :  { %v397_v20 = vmul.f32 1.442695, %v396_v19 }
 0x51b   :  { %v405_v24 = vpop.permute.xlu1 %404 }
 0x51c   :  { %926 = vpow2.f32 %v397_v20 }
 0x529   :  { %v927_v21 = vpop.eup %926 }
 0x52a   :  { %v399_v22 = vsel %vm392_vm8, %v927_v21, 0.0 }
 0x52b   :  { %400 = vadd.xlane.f32.xlu0 %v399_v22 }
 0x541   :  { %406 = vrot.lane.b32.xlu0 %v299_v6, %s965_s22 }
 0x5b4   :  { %v401_v16 = vpop.xlane.xlu0 %400 }
 0x5b5   :  { %928 = vrcp.f32 %v401_v16 }
 0x5b8   :  { %v407_v23 = vpop.permute.xlu0 %406 }
 0x5b9   :  { %855 = vmatpush3.msra.mxu1 %v407_v23 }
 0x5ba   :  { %856 = vmatprep.subr.mxu1 %v961_v9 }
 0x5bb   :  { %857 = vmatpush3.msra.mxu1 %v405_v24 }
 0x5bc   :  { %861 = vmatprep.subr.bf16.mxu1 %v961_v9 }
 0x5c2   :  { %v929_v25 = vpop.eup %928 }
 0x5c3   :  { %v403_v27 = vmul.f32 %v929_v25, %v927_v21 }
 0x5c5   :  { %859 = vmatmul.mubr.msk.f32.vlgmr.msra.gmra.mxu1 %vm410_vm9, %v403_v27 }
 0x5c6   :  { %862 = vmatpush3.bf16.msra.mxu1 %v914_v26  ;;  %865 = vmatprep.mubr.msk.bf16.mxu1 %vm963_vm6, %v961_v9 }
 0x5c7   :  { %863 = vmatprep.subr.bf16.mxu1 %v961_v9 }
 0x5ca   :  { %864 = vmatpush3.bf16.msra.mxu1 %v915_v28 }
 0x5cb   :  { %869 = vmatprep.subr.bf16.mxu1 %v961_v9 }
 0x685   :  { %v480_v29 = vpop.f32.mrf.mxu1 }
 0x686   :  { %v484_v30 = vpack.c.bf16 %v480_v29, %v480_v29 }
 0x687   :  { %v860_v31 = vpop.f32.mrf.mxu1 }
 0x688   :  { %866 = vmatmul.mubr.msk.bf16.vlgmr.msra.gmra.mxu1 %vm150_vm4, %v484_v30  ;;  %v817_v30 = vld [vmem:[%s1147_s2 + $0x6] ss:$0 sm:$0xff] }
 0x689   :  { %873 = vmatprep.mubr.msk.bf16.mxu1 %vm963_vm6, %v961_v9  ;;  %870 = vmatpush3.bf16.msra.mxu1 %v916_v45 }
 0x68a   :  { %871 = vmatprep.subr.bf16.mxu1 %v961_v9 }
 0x68d   :  { %872 = vmatpush3.bf16.msra.mxu1 %v917_v46 }
 0x68e   :  { %877 = vmatprep.subr.bf16.mxu1 %v961_v9 }
 0x748   :  { %v543_v33 = vpop.f32.mrf.mxu1 }
 0x749   :  { %v544_v34 = vadd.f32 %v801_v32, %v543_v33  ;;  %v818_v32 = vld [vmem:[%s1147_s2 + $0x7] ss:$0 sm:$0xff] }
 0x74a   :  { %v867_v35 = vpop.f32.mrf.mxu1 }
 0x74b   :  { %v549_v36 = vadd.f32 %v544_v34, %v1056_v62 }
 0x74c   :  { %v546_v37 = vpop.f32.mrf.mxu1 }
 0x74d   :  { %v553_v38 = vsel %vm552_vm10, %v549_v36, 0.0 }
 0x74e   :  { %554 = vadd.xlane.f32.xlu1 %v553_v38  ;;  %v868_v39 = vpop.f32.mrf.mxu1 }
 0x7d7   :  { %v555_v40 = vpop.xlane.xlu1 %554 }
 0x7d8   :  { %v556_v41 = vmul.f32 0.03125, %v555_v40 }
 0x7da   :  { %v557_v42 = vsub.f32 %v549_v36, %v556_v41 }
 0x7dc   :  { %v558_v43 = vmul.f32 %v557_v42, %v557_v42 }
 0x7de   :  { %v559_v44 = vsel %vm552_vm10, %v558_v43, 0.0 }
 0x7df   :  { %560 = vadd.xlane.f32.xlu0 %v559_v44 }
 0x868   :  { %v561_v47 = vpop.xlane.xlu0 %560 }
 0x869   :  { %v562_v48 = vmul.f32 0.03125, %v561_v47 }
 0x86b   :  { %v563_v49 = vadd.f32 1e-12, %v562_v48 }
 0x86d   :  { %930 = vrsqrt.f32 %v563_v49 }
 0x87a   :  { %v931_v50 = vpop.eup %930 }
 0x87b   :  { %v565_v52 = vmul.f32 %v931_v50, %v557_v42 }
 0x87d   :  { %v570_v54 = vmul.f32 %v805_v51, %v565_v52 }
 0x87f   :  { %v575_v55 = vadd.f32 %v806_v53, %v570_v54 }
 0x881   :  { %v576_v56 = vpack.c.bf16 %v575_v55, %v575_v55 }
 0x883   :  { %874 = vmatmul.mubr.msk.bf16.vlgmr.msra.gmra.mxu1 %vm150_vm4, %v576_v56 }
 0x884   :  { %885 = vmatprep.mubr.msk.bf16.mxu1 %vm963_vm6, %v961_v9  ;;  %878 = vmatpush3.bf16.msra.mxu1 %v918_v57 }
 0x885   :  { %879 = vmatprep.subr.bf16.mxu1 %v961_v9 }
 0x888   :  { %880 = vmatpush3.bf16.msra.mxu1 %v919_v58 }
 0x889   :  { %881 = vmatprep.subr.bf16.mxu1 %v961_v9 }
 0x88c   :  { %882 = vmatpush3.bf16.msra.mxu1 %v920_v59 }
 0x88d   :  { %883 = vmatprep.subr.bf16.mxu1 %v961_v9 }
 0x890   :  { %884 = vmatpush3.bf16.msra.mxu1 %v921_v60 }
 0x943   :  { %v635_v62 = vpop.f32.mrf.mxu1 }
 0x944   :  { %v636_v63 = vadd.f32 %v807_v61, %v635_v62 }
 0x945   :  { %v875_v0 = vpop.f32.mrf.mxu1 }
 0x946   :  { %v641_v1 = vmul.f32 %v636_v63, %v636_v63 }
 0x947   :  { %v638_v2 = vpop.f32.mrf.mxu1 }
 0x948   :  { %v642_v3 = vmul.f32 %v641_v1, %v636_v63 }
 0x949   :  { %v876_v4 = vpop.f32.mrf.mxu1 }
 0x94a   :  { %v643_v5 = vmul.f32 0.044715, %v642_v3 }
 0x94c   :  { %v644_v6 = vadd.f32 %v643_v5, %v636_v63 }
 0x94e   :  { %v645_v7 = vmul.f32 0.7978846, %v644_v6 }
 0x950   :  { %932 = vtanh.f32 %v645_v7 }
 0x95d   :  { %v933_v9 = vpop.eup %932 }
 0x95e   :  { %v647_v8 = vadd.f32 1.0, %v933_v9 }
 0x960   :  { %v648_v10 = vmul.f32 0.5, %v647_v8 }
 0x962   :  { %v649_v11 = vmul.f32 %v648_v10, %v636_v63 }
 0x964   :  { %v650_v12 = vpack.c.bf16 %v649_v11, %v649_v11 }
 0x966   :  { %886 = vmatmul.mubr.msk.bf16.vlgmr.msra.gmra.mxu1 %vm688_vm11, %v650_v12 }
 0xa26   :  { %v726_v14 = vpop.f32.mrf.mxu1 }
 0xa27   :  { %v727_v15 = vadd.f32 %v811_v13, %v726_v14 }
 0xa28   :  { %v887_v17 = vpop.f32.mrf.mxu1 }
 0xa29   :  { %v732_v18 = vadd.f32 %v727_v15, %v575_v55 }
 0xa2a   :  { %v729_v19 = vpop.f32.mrf.mxu1 }
 0xa2b   :  { %v735_v20 = vsel %vm552_vm10, %v732_v18, 0.0 }
 0xa2c   :  { %736 = vadd.xlane.f32.xlu0 %v735_v20  ;;  %v888_v21 = vpop.f32.mrf.mxu1 }
 0xab5   :  { %v737_v22 = vpop.xlane.xlu0 %736 }
 0xab6   :  { %v738_v16 = vmul.f32 0.03125, %v737_v22 }
 0xab8   :  { %v739_v23 = vsub.f32 %v732_v18, %v738_v16 }
 0xaba   :  { %v740_v24 = vmul.f32 %v739_v23, %v739_v23 }
 0xabc   :  { %v741_v25 = vsel %vm552_vm10, %v740_v24, 0.0 }
 0xabd   :  { %742 = vadd.xlane.f32.xlu1 %v741_v25 }
 0xb46   :  { %v743_v26 = vpop.xlane.xlu1 %742 }
 0xb47   :  { %v744_v27 = vmul.f32 0.03125, %v743_v26 }
 0xb49   :  { %v745_v28 = vadd.f32 1e-12, %v744_v27 }
 0xb4b   :  { %934 = vrsqrt.f32 %v745_v28 }
 0xb58   :  { %v935_v29 = vpop.eup %934 }
 0xb59   :  { %v747_v31 = vmul.f32 %v935_v29, %v739_v23 }
 0xb5b   :  { %v752_v33 = vmul.f32 %v817_v30, %v747_v31 }
 0xb5d   :  { %v757_v34 = vadd.f32 %v818_v32, %v752_v33 }
 0xb5f   :  { %758 = vst.msk [vmem:[#allocation2] sm:$0x3] %vm552_vm10, %v757_v34 }
 0xb60   :  { %947 = shalt.err (!%p944_p4)
}
 0xb61   :  { %768 = dma.vmem_to_hbm [thread:$0]  %s766_s24, 32, %s1148_s3, [#allocation3]  }
 0xb62   :  { %956 = dma.done.wait [#allocation3], 32  }
 0xb63   :  { %957 = vsyncadd [#allocation3], 4294967264 }
 0xb64   :  { %772 = vsyncpa [#allocation3], 1 }

</bundles_post_ra>
